<compile_context>
chip_gen: v6e
topology: v6e:2x2x1
jax: 0.10.0
libtpu: 0.0.40
codegen_flags: <defaults>
</compile_context>

<pallas_src>
import jax
import jax.numpy as jnp
from jax import lax
from jax.experimental import pallas as pl
from jax.experimental.pallas import tpu as pltpu


def _round_up(x: int, m: int) -> int:
    return ((x + m - 1) // m) * m


def _make_loss_kernel(*, deta: float, tn: int, n: int, tiles_per_part: int):
    def loss_kernel(out_ref, loss_ref):
        # out_ref : (tn, C) logits tile in VMEM (input dtype)
        # loss_ref: (1, tn, 1) f32 per-core accumulator (resident across the
        #           "arbitrary" tile axis; one slab per parallel core slot)
        p = pl.program_id(0)   # parallel (core) axis
        t = pl.program_id(1)   # reduction (tile) axis

        @pl.when(t == 0)
        def _():
            loss_ref[...] = jnp.zeros_like(loss_ref)

        x = out_ref[...]                                   # (tn, C), input dtype
        x_max = jnp.max(x, axis=1, keepdims=True)          # (tn, 1) lane reduce
        e = jnp.exp(x - x_max)                             # EUP; stays in input dtype
        denom = jnp.sum(e, axis=1, keepdims=True,
                        dtype=jnp.float32)                 # (tn, 1) f32

        # max(softmax(x), dim=1) == 1 / sum(exp(x - max(x)))
        r = pl.reciprocal(denom, approx=True)              # EUP approx
        m = r * (2.0 - denom * r)                          # one Newton step -> ~f32 exact

        loss_vec = jnp.where(m > 0.5, m, jnp.float32(deta))  # (tn, 1) f32

        # Mask rows outside the real batch: ragged last tile and the overshoot
        # tiles that appear when num_tiles is not divisible by the core count
        # (their input block index is clamped in the index_map; data ignored).
        tile_id = p * tiles_per_part + t
        rows = tile_id * tn + lax.broadcasted_iota(jnp.int32, (tn, 1), 0)
        loss_vec = jnp.where(rows < n, loss_vec, 0.0)

        loss_ref[...] += loss_vec[None]                    # (1, tn, 1) accumulate

    return loss_kernel


def myloss_func(out: jax.Array, label: jax.Array | None = None, *,
                deta: float = 0.1, block_n: int = 512):
    """Pallas equivalent of MylossFunc(deta)(out, label). Returns scalar f32 loss."""
    del label  # unused by the original forward's computation
    n, c = out.shape

    # Row-tile size: multiple of 8 sublanes, capped by a conservative per-buffer
    # VMEM budget (safe under v7x's 32 MiB scoped VMEM with double buffering).
    vmem_budget_bytes = 8 * 1024 * 1024
    max_rows_by_vmem = max(8, (vmem_budget_bytes // (2 * c * out.dtype.itemsize)) // 8 * 8)
    tn = min(block_n, _round_up(n, 8), max_rows_by_vmem)

    num_tiles = pl.cdiv(n, tn)
    num_parts = 2 if num_tiles >= 2 else 1          # use both v7x TensorCores
    tiles_per_part = pl.cdiv(num_tiles, num_parts)

    kernel = _make_loss_kernel(deta=float(deta), tn=tn, n=n,
                               tiles_per_part=tiles_per_part)

    partials = pl.pallas_call(
        kernel,
        out_shape=jax.ShapeDtypeStruct((num_parts, tn, 1), jnp.float32),
        grid=(num_parts, tiles_per_part),
        in_specs=[
            pl.BlockSpec(
                (tn, c),
                # Clamp so overshoot steps still read a valid window (their
                # contribution is masked to zero inside the kernel).
                lambda p, t: (jnp.minimum(p * tiles_per_part + t, num_tiles - 1), 0),
            )
        ],
        out_specs=pl.BlockSpec((1, tn, 1), lambda p, t: (p, 0, 0)),
        compiler_params=pltpu.CompilerParams(
            dimension_semantics=("parallel", "arbitrary")),
    )(out)

    return jnp.sum(partials)


def _reference_loss(out, deta):
    sm = jax.nn.softmax(out.astype(jnp.float32), axis=1)
    m = jnp.max(sm, axis=1)
    return jnp.sum(jnp.where(m > 0.5, m, jnp.float32(deta)))


if __name__ == "__main__":
    key = jax.random.PRNGKey(0)
    k1, k2, k3 = jax.random.split(key, 3)
    deta = 0.1

    # Small shape consistent with the module: logits (batch=8, classes=32).
    out = jax.random.normal(k1, (8, 32), dtype=jnp.float32) * 3.0
    label = jax.random.randint(k2, (8,), 0, 32)  # unused, mirrors torch signature

    loss = myloss_func(out, label, deta=deta)
    loss = jax.block_until_ready(loss)
    ref = _reference_loss(out, deta)
    assert jnp.allclose(loss, ref, rtol=1e-4, atol=1e-4), (loss, ref)

    # Larger ragged batch: exercises N-tiling, the dual-slot parallel split and
    # the row mask on the padded last tile.
    out2 = jax.random.normal(k3, (1000, 32), dtype=jnp.float32) * 3.0
    loss2 = jax.block_until_ready(myloss_func(out2, None, deta=deta))
    ref2 = _reference_loss(out2, deta)
    assert jnp.allclose(loss2, ref2, rtol=1e-4, atol=1e-4), (loss2, ref2)

    print("KERNEL_OK")
</pallas_src>

<mosaic_0001>
module attributes {stable_mosaic.version = 11 : i64} {
  func.func @loss_kernel(%arg0: i32, %arg1: i32, %arg2: memref<8x32xf32, #tpu.memory_space<vmem>>, %arg3: memref<1x8x1xf32, #tpu.memory_space<vmem>>) attributes {dimension_semantics = [#tpu.dimension_semantics<parallel>, #tpu.dimension_semantics<arbitrary>], iteration_bounds = array<i64: 1, 1>, scalar_prefetch = 0 : i64, scratch_operands = 0 : i64, tpu.core_type = #tpu.core_type<tc>, window_params = [{transform_indices = @transform_0, window_bounds = array<i64: 8, 32>}, {transform_indices = @transform_1, window_bounds = array<i64: 1, 8, 1>}]} {
    %c0_i32 = arith.constant 0 : i32
    %0 = arith.cmpi eq, %arg1, %c0_i32 : i32
    %1 = arith.extui %0 : i1 to i32
    %c0_i32_0 = arith.constant 0 : i32
    %2 = arith.cmpi ne, %1, %c0_i32_0 : i32
    scf.if %2 {
      %cst_14 = arith.constant 0.000000e+00 : f32
      %34 = vector.broadcast %cst_14 : f32 to vector<1x8x1xf32>
      %c0_15 = arith.constant 0 : index
      %c0_16 = arith.constant 0 : index
      %c0_17 = arith.constant 0 : index
      %35 = vector.load %arg3[%c0_15, %c0_16, %c0_17] : memref<1x8x1xf32, #tpu.memory_space<vmem>>, vector<1x8x1xf32>
      tpu.vector_store %arg3[%c0_15, %c0_16, %c0_17], %34 {strides = array<i32>} : memref<1x8x1xf32, #tpu.memory_space<vmem>>, vector<1x8x1xf32>,
    } else {
    }
    %c0 = arith.constant 0 : index
    %c0_1 = arith.constant 0 : index
    %3 = vector.load %arg2[%c0, %c0_1] : memref<8x32xf32, #tpu.memory_space<vmem>>, vector<8x32xf32>
    %cst = arith.constant dense<0xFF800000> : vector<8xf32>
    %4 = vector.multi_reduction <maximumf>, %3, %cst [1] : vector<8x32xf32> to vector<8xf32>
    %5 = vector.shape_cast %4 : vector<8xf32> to vector<8x1xf32>
    %6 = vector.broadcast %5 : vector<8x1xf32> to vector<8x32xf32>
    %7 = arith.subf %3, %6 : vector<8x32xf32>
    %8 = math.exp %7 : vector<8x32xf32>
    %cst_2 = arith.constant dense<0.000000e+00> : vector<8xf32>
    %9 = vector.multi_reduction <add>, %8, %cst_2 [1] : vector<8x32xf32> to vector<8xf32>
    %10 = vector.shape_cast %9 : vector<8xf32> to vector<8x1xf32>
    %11 = tpu.reciprocal %10 {approx = true} : vector<8x1xf32> -> vector<8x1xf32>
    %12 = arith.mulf %10, %11 : vector<8x1xf32>
    %cst_3 = arith.constant 2.000000e+00 : f32
    %13 = vector.broadcast %cst_3 : f32 to vector<8x1xf32>
    %14 = arith.subf %13, %12 : vector<8x1xf32>
    %15 = arith.mulf %11, %14 : vector<8x1xf32>
    %cst_4 = arith.constant 5.000000e-01 : f32
    %16 = vector.broadcast %cst_4 : f32 to vector<8x1xf32>
    %17 = arith.cmpf ogt, %15, %16 : vector<8x1xf32>
    %cst_5 = arith.constant 1.000000e-01 : f32
    %18 = vector.broadcast %cst_5 : f32 to vector<8x1xf32>
    %19 = arith.select %17, %15, %18 : vector<8x1xi1>, vector<8x1xf32>
    %c1_i32 = arith.constant 1 : i32
    %20 = arith.muli %arg0, %c1_i32 : i32
    %21 = arith.addi %20, %arg1 : i32
    %c8_i32 = arith.constant 8 : i32
    %22 = arith.muli %21, %c8_i32 : i32
    %23 = tpu.iota {dimensions = array<i32: 0>} : vector<8x1xi32>
    %24 = vector.broadcast %22 : i32 to vector<8x1xi32>
    %25 = arith.addi %24, %23 : vector<8x1xi32>
    %c8_i32_6 = arith.constant 8 : i32
    %26 = vector.broadcast %c8_i32_6 : i32 to vector<8x1xi32>
    %27 = arith.cmpi slt, %25, %26 : vector<8x1xi32>
    %cst_7 = arith.constant 0.000000e+00 : f32
    %28 = vector.broadcast %cst_7 : f32 to vector<8x1xf32>
    %29 = arith.select %27, %19, %28 : vector<8x1xi1>, vector<8x1xf32>
    %c0_8 = arith.constant 0 : index
    %c0_9 = arith.constant 0 : index
    %c0_10 = arith.constant 0 : index
    %30 = vector.load %arg3[%c0_8, %c0_9, %c0_10] : memref<1x8x1xf32, #tpu.memory_space<vmem>>, vector<1x8x1xf32>
    %31 = vector.shape_cast %29 : vector<8x1xf32> to vector<1x8x1xf32>
    %32 = arith.addf %30, %31 : vector<1x8x1xf32>
    %c0_11 = arith.constant 0 : index
    %c0_12 = arith.constant 0 : index
    %c0_13 = arith.constant 0 : index
    %33 = vector.load %arg3[%c0_11, %c0_12, %c0_13] : memref<1x8x1xf32, #tpu.memory_space<vmem>>, vector<1x8x1xf32>
    tpu.vector_store %arg3[%c0_11, %c0_12, %c0_13], %32 {strides = array<i32>} : memref<1x8x1xf32, #tpu.memory_space<vmem>>, vector<1x8x1xf32>,
    return
  }
  func.func @transform_0(%arg0: i32, %arg1: i32) -> (i32, i32) {
    %c1_i32 = arith.constant 1 : i32
    %0 = arith.muli %arg0, %c1_i32 : i32
    %1 = arith.addi %0, %arg1 : i32
    %c0_i32 = arith.constant 0 : i32
    %2 = arith.minsi %1, %c0_i32 : i32
    %c0_i32_0 = arith.constant 0 : i32
    %c0_i32_1 = arith.constant 0 : i32
    return %2, %c0_i32_0 : i32, i32
  }
  func.func @transform_1(%arg0: i32, %arg1: i32) -> (i32, i32, i32) {
    %c0_i32 = arith.constant 0 : i32
    %c0_i32_0 = arith.constant 0 : i32
    %c0_i32_1 = arith.constant 0 : i32
    return %arg0, %c0_i32, %c0_i32_0 : i32, i32, i32
  }
}

</mosaic_0001>

<bundles_post_ra>
// kernel: tpu_custom_call.1
= control target key start
LH: loop header
LB: loop body
LE: loop exit
PB: predicated region body
PF: predicated region fallthrough
CT: control target
= control target key end

     0   :  { %6 = vsyncpa [#allocation3], 0  ;;  %s98_s6 = smov [#allocation2]   ;;  %s124_s0 = inlined_call_operand.hbm [shape: f32[8,32], index: 0, kind: input, shape index: {}]   ;;  %s125_s1 = inlined_call_operand.vmem [shape: f32[1,8,1], index: 1, kind: output, shape index: {}]  }
   0x1   :  { %s18_s7 = sshll.u32 %s98_s6, 4  ;;  %s19_s7 = int_to_ptr.vmem [resolvable:$true] %s18_s7 }
   0x2   :  { %s84_s8 = scalar_lea.vmem %s19_s7, 128  ;;  %p89_p1 = scmp.lt.s32.totalorder %s19_s7, %s19_s7 }
   0x3   :  { %p85_p0 = scmp.ne.s32.totalorder %s19_s7, %s84_s8  ;;  %p90_p2 = scmp.lt.s32.totalorder %s84_s8, %s84_s8 }
   0x5   :  { %p91_p3 = por %p90_p2, %p89_p1 }
   0x7   :  { %p92_p4 = pnand %p91_p3, %p85_p0 }
   0x9   :  { %95 = shalt.err (!%p92_p4)
}
   0xa   :  { %21 = dma.hbm_to_vmem [thread:$0]  %s124_s0, 128, %s19_s7, [#allocation3]  }
   0xb   :  { %96 = dma.done.wait [#allocation3], 128  }
   0xc   :  { %97 = vsyncadd [#allocation3], 4294967168  ;;  %vm32_vm0 = vcmask 7168   ;;  %v99_v0 = vmov 0.0   ;;  %vm35_vm1 = vcmask 261120   ;;  %v34_v1 = vld [vmem:[#allocation2] sm:$0xff] }
   0xd   :  { %33 = vst.msk [vmem:[%s125_s1] sm:$0xff] %vm32_vm0, %v99_v0  ;;  %v36_v2 = vsel %vm35_vm1, %v34_v1, -inf }
   0xe   :  { %37 = vmax.xlane.f32.xlu0 %v36_v2 }
  0x14   :  { %v59_v13 = vld [vmem:[%s125_s1] sm:$0xff] }
  0x97   :  { %v38_v3 = vpop.xlane.xlu0 %37 }
  0x98   :  { %v39_v4 = vsub.f32 %v34_v1, %v38_v3 }
  0x9a   :  { %v40_v5 = vmul.f32 1.442695, %v39_v4 }
  0x9c   :  { %72 = vpow2.f32 %v40_v5 }
  0xa9   :  { %v73_v6 = vpop.eup %72 }
  0xaa   :  { %v42_v7 = vsel %vm35_vm1, %v73_v6, 0.0 }
  0xab   :  { %43 = vadd.xlane.f32.xlu0 %v42_v7 }
 0x134   :  { %v44_v8 = vpop.xlane.xlu0 %43 }
 0x135   :  { %74 = vrcp.f32 %v44_v8 }
 0x142   :  { %v75_v9 = vpop.eup %74 }
 0x143   :  { %v46_v10 = vmul.f32 %v75_v9, %v44_v8 }
 0x145   :  { %v47_v11 = vsub.f32 2.0, %v46_v10 }
 0x147   :  { %v48_v12 = vmul.f32 %v75_v9, %v47_v11 }
 0x149   :  { %vm49_vm2 = vcmp.gt.f32.partialorder %v48_v12, 0.5 }
 0x14a   :  { %v50_v14 = vsel %vm49_vm2, %v48_v12, 0.1 }
 0x14b   :  { %v60_v15 = vadd.f32 %v59_v13, %v50_v14 }
 0x14d   :  { %62 = vst.msk [vmem:[%s125_s1] sm:$0xff] %vm32_vm0, %v60_v15 }
 0x14e   :  { %67 = vsyncpa [#allocation3], 1 }

</bundles_post_ra>
